<compile_context>
chip_gen: v7x
topology: tpu7x:2x2x1
jax: 0.10.0
libtpu: 0.0.40
codegen_flags: <defaults>
</compile_context>

<pallas_src>
import math
import jax
import jax.numpy as jnp
from jax import lax
from jax.experimental import pallas as pl
from jax.experimental.pallas import tpu as pltpu


def _make_kernel(H: int, d: int, hd: int, tq: int, compute_dtype):
    f32 = jnp.float32
    cdt = compute_dtype

    def kernel(q_ref, k_ref, v_ref, wo_ref, o_ref, m_s, l_s, acc_s):
        ki = pl.program_id(2)

        @pl.when(ki == 0)
        def _init():
            m_s[...] = jnp.full(m_s.shape, -jnp.inf, dtype=f32)
            l_s[...] = jnp.zeros(l_s.shape, dtype=f32)
            acc_s[...] = jnp.zeros(acc_s.shape, dtype=f32)

        # Pre-projected, pre-scaled (q), head-major tiles.
        q = q_ref[0]    # (H, tq,  hd)  compute dtype
        k = k_ref[0]    # (H, tkv, hd)
        v = v_ref[0]    # (H, tkv, hd)

        # Scores for all heads at once (batched over leading head axis);
        # contraction over the last dims -> no explicit transpose.
        s = jnp.einsum('hqc,hkc->hqk', q, k,
                       preferred_element_type=f32)          # (H, tq, tkv) f32

        m_prev = m_s[...]                                    # (H, tq, 1)
        m_new = jnp.maximum(m_prev, jnp.max(s, axis=-1, keepdims=True))
        alpha = jnp.exp(m_prev - m_new)
        p = jnp.exp(s - m_new)                               # (H, tq, tkv) f32
        l_s[...] = alpha * l_s[...] + jnp.sum(p, axis=-1, keepdims=True)
        acc_s[...] = alpha * acc_s[...] + jnp.einsum(
            'hqk,hkc->hqc', p.astype(cdt), v, preferred_element_type=f32)
        m_s[...] = m_new

        @pl.when(ki == pl.num_programs(2) - 1)
        def _finalize():
            def head_out(h, out):
                inv_l = pl.reciprocal(l_s[h], approx=True)   # EUP seed
                inv_l = inv_l * (2.0 - l_s[h] * inv_l)       # 1 Newton step
                yh = (acc_s[h] * inv_l).astype(cdt)          # (tq, hd)
                # Fused per-head output projection into one (tq, d) buffer.
                return out + jnp.dot(yh, wo_ref[h], preferred_element_type=f32)

            out = jnp.zeros((tq, d), dtype=f32)
            if H >= 8:
                out = lax.fori_loop(0, H, head_out, out, unroll=2)
            else:
                for h in range(H):          # H small & static -> full unroll
                    out = head_out(h, out)
            o_ref[0] = out.astype(o_ref.dtype)               # single lane-dense store

    return kernel


def _vmem_budget_bytes(default_bytes: int = 48 << 20) -> int:
    """Per-generation VMEM budget: ~80% of capacity with >=16 MiB headroom."""
    try:
        cap = pltpu.get_tpu_info().vmem_capacity_bytes
    except Exception:
        return default_bytes
    return max(default_bytes, min(int(cap * 0.8), cap - (16 << 20)))


def _pick_tile(n: int, target: int, sub_min: int) -> int:
    """Largest divisor of n that is <= target, preferring multiples of 128,
    then multiples of sub_min (16 for bf16, 8 for f32)."""
    if n <= target:
        return n
    for step in (128, sub_min):
        t = (target // step) * step
        while t >= step:
            if n % t == 0:
                return t
            t -= step
    return n


def causal_self_attention(x, w_attn, w_proj, H: int, *,
                          q_tile=None, kv_tile=None, compute_dtype=None):
    """x: (B, T, d); w_attn: (d, 3d) with [q|k|v] columns; w_proj: (d, d).

    Matches the PyTorch forward: NO causal mask, dropouts in eval mode.
    compute_dtype defaults to bf16 (MXU-native on v5e/v6e/v7x); softmax
    statistics and accumulators are always f32.
    """
    B, T, d = x.shape
    assert d % H == 0
    hd = d // H
    out_dtype = x.dtype
    cdt = jnp.bfloat16 if compute_dtype is None else compute_dtype

    vmem_budget = _vmem_budget_bytes()
    tile_target = 512 if vmem_budget >= (80 << 20) else 256  # big tiles on 128 MiB parts
    sub_min = 16 if cdt == jnp.bfloat16 else 8
    tq = q_tile if q_tile is not None else _pick_tile(T, tile_target, sub_min)
    tkv = kv_tile if kv_tile is not None else _pick_tile(T, tile_target, sub_min)
    assert T % tq == 0 and T % tkv == 0

    # --- Prologue (plain XLA, near-peak GEMM): QKV projection ONCE per token,
    # softmax scale folded into W_q for free, heads split head-major. ---------
    scale = 1.0 / math.sqrt(hd)
    w_qkv = jnp.concatenate([w_attn[:, :d] * scale, w_attn[:, d:]], axis=1).astype(cdt)
    qkv = jnp.einsum('btd,de->bte', x.astype(cdt), w_qkv,
                     preferred_element_type=jnp.float32)      # (B, T, 3d) f32 acc

    def split_heads(t):
        return t.reshape(B, T, H, hd).transpose(0, 2, 1, 3).astype(cdt)  # (B, H, T, hd)

    q = split_heads(qkv[..., :d])          # pre-scaled
    k = split_heads(qkv[..., d:2 * d])
    v = split_heads(qkv[..., 2 * d:])
    w_o = w_proj.reshape(H, hd, d).astype(cdt)                # head-major output weights

    kernel = _make_kernel(H, d, hd, tq, cdt)
    grid = (B, T // tq, T // tkv)          # kv axis innermost ("arbitrary" reduction)

    return pl.pallas_call(
        kernel,
        out_shape=jax.ShapeDtypeStruct((B, T, d), out_dtype),
        grid_spec=pltpu.PrefetchScalarGridSpec(
            num_scalar_prefetch=0,
            grid=grid,
            in_specs=[
                # q block is ki-invariant -> fetched once per (b, qi), resident over kv loop
                pl.BlockSpec((1, H, tq, hd), lambda b, qi, ki: (b, 0, qi, 0)),
                pl.BlockSpec((1, H, tkv, hd), lambda b, qi, ki: (b, 0, ki, 0)),
                pl.BlockSpec((1, H, tkv, hd), lambda b, qi, ki: (b, 0, ki, 0)),
                # grid-invariant output-projection weights
                pl.BlockSpec((H, hd, d), lambda b, qi, ki: (0, 0, 0)),
            ],
            out_specs=pl.BlockSpec((1, tq, d), lambda b, qi, ki: (b, qi, 0)),
            scratch_shapes=[
                pltpu.VMEM((H, tq, 1), jnp.float32),    # running max (f32)
                pltpu.VMEM((H, tq, 1), jnp.float32),    # running denom (f32)
                pltpu.VMEM((H, tq, hd), jnp.float32),   # per-head output accumulator (f32)
            ],
        ),
        compiler_params=pltpu.CompilerParams(
            dimension_semantics=("parallel", "parallel", "arbitrary"),
            vmem_limit_bytes=vmem_budget,
        ),
    )(q, k, v, w_o)


def reference(x, w_attn, w_proj, H):
    """Pure-JAX f32 reference mirroring the PyTorch forward (eval mode)."""
    B, T, d = x.shape
    hd = d // H
    qkv = x @ w_attn
    q, k, v = qkv[..., :d], qkv[..., d:2 * d], qkv[..., 2 * d:]

    def split_heads(t):
        return t.reshape(B, T, H, hd).transpose(0, 2, 1, 3)   # (B, H, T, hd)

    q, k, v = split_heads(q), split_heads(k), split_heads(v)
    att = (q @ k.transpose(0, 1, 3, 2)) * (1.0 / math.sqrt(hd))
    att = jax.nn.softmax(att, axis=-1)
    y = (att @ v).transpose(0, 2, 1, 3).reshape(B, T, d)
    return y @ w_proj


if __name__ == "__main__":
    # Small shapes; the f32 run uses tq = tkv = 8 < T so the online-softmax
    # kv loop and the init/finalize phases are exercised across grid steps.
    B, T, d, H = 2, 16, 32, 4

    key = jax.random.PRNGKey(0)
    kx, kw1, kw2 = jax.random.split(key, 3)

    x = jax.random.normal(kx, (B, T, d), dtype=jnp.float32)
    # deterministic "Linear" weights (bias=False), stored as (in, out)
    w_attn = jax.random.normal(kw1, (d, 3 * d), jnp.float32) * (1.0 / math.sqrt(d))
    w_proj = jax.random.normal(kw2, (d, d), jnp.float32) * (1.0 / math.sqrt(d))

    ref = reference(x, w_attn, w_proj, H)

    # 1) f32 compute path, tight tolerance.
    out_f32 = causal_self_attention(x, w_attn, w_proj, H,
                                    q_tile=8, kv_tile=8,
                                    compute_dtype=jnp.float32)
    out_f32 = jax.block_until_ready(out_f32)
    assert out_f32.shape == ref.shape
    err_f32 = float(jnp.max(jnp.abs(out_f32 - ref)))
    assert jnp.allclose(out_f32, ref, atol=1e-3, rtol=1e-3), \
        f"f32 mismatch vs reference (max abs err {err_f32})"

    # 2) default fast path: bf16 MXU operands, f32 stats/accumulators.
    out_bf16 = causal_self_attention(x, w_attn, w_proj, H)
    out_bf16 = jax.block_until_ready(out_bf16)
    err_bf16 = float(jnp.max(jnp.abs(out_bf16.astype(jnp.float32) - ref)))
    assert jnp.allclose(out_bf16.astype(jnp.float32), ref, atol=1.5e-1, rtol=5e-2), \
        f"bf16 mismatch vs reference (max abs err {err_bf16})"

    print("KERNEL_OK")
</pallas_src>

<mosaic_0001>
module attributes {stable_mosaic.version = 11 : i64} {
  func.func @kernel(%arg0: i32, %arg1: i32, %arg2: i32, %arg3: memref<1x4x8x8xf32, #tpu.memory_space<vmem>>, %arg4: memref<1x4x8x8xf32, #tpu.memory_space<vmem>>, %arg5: memref<1x4x8x8xf32, #tpu.memory_space<vmem>>, %arg6: memref<4x8x32xf32, #tpu.memory_space<vmem>>, %arg7: memref<1x8x32xf32, #tpu.memory_space<vmem>>, %arg8: memref<4x8x1xf32, #tpu.memory_space<vmem>>, %arg9: memref<4x8x1xf32, #tpu.memory_space<vmem>>, %arg10: memref<4x8x8xf32, #tpu.memory_space<vmem>>) attributes {dimension_semantics = [#tpu.dimension_semantics<parallel>, #tpu.dimension_semantics<parallel>, #tpu.dimension_semantics<arbitrary>], iteration_bounds = array<i64: 2, 2, 2>, scalar_prefetch = 0 : i64, scratch_operands = 3 : i64, tpu.core_type = #tpu.core_type<tc>, window_params = [{transform_indices = @transform_0, window_bounds = array<i64: 1, 4, 8, 8>}, {transform_indices = @transform_1, window_bounds = array<i64: 1, 4, 8, 8>}, {transform_indices = @transform_2, window_bounds = array<i64: 1, 4, 8, 8>}, {pipeline_mode = #tpu.pipeline_mode<synchronous>, transform_indices = @transform_3, window_bounds = array<i64: 4, 8, 32>}, {transform_indices = @transform_4, window_bounds = array<i64: 1, 8, 32>}]} {
    %c0_i32 = arith.constant 0 : i32
    %0 = arith.cmpi eq, %arg2, %c0_i32 : i32
    %1 = arith.extui %0 : i1 to i32
    %c0_i32_0 = arith.constant 0 : i32
    %2 = arith.cmpi ne, %1, %c0_i32_0 : i32
    scf.if %2 {
      %cst_34 = arith.constant 0xFF800000 : f32
      %35 = vector.broadcast %cst_34 : f32 to vector<4x8x1xf32>
      %c0_35 = arith.constant 0 : index
      %c0_36 = arith.constant 0 : index
      %c0_37 = arith.constant 0 : index
      %36 = vector.load %arg8[%c0_35, %c0_36, %c0_37] : memref<4x8x1xf32, #tpu.memory_space<vmem>>, vector<4x8x1xf32>
      tpu.vector_store %arg8[%c0_35, %c0_36, %c0_37], %35 {strides = array<i32>} : memref<4x8x1xf32, #tpu.memory_space<vmem>>, vector<4x8x1xf32>,
      %cst_38 = arith.constant 0.000000e+00 : f32
      %37 = vector.broadcast %cst_38 : f32 to vector<4x8x1xf32>
      %c0_39 = arith.constant 0 : index
      %c0_40 = arith.constant 0 : index
      %c0_41 = arith.constant 0 : index
      %38 = vector.load %arg9[%c0_39, %c0_40, %c0_41] : memref<4x8x1xf32, #tpu.memory_space<vmem>>, vector<4x8x1xf32>
      tpu.vector_store %arg9[%c0_39, %c0_40, %c0_41], %37 {strides = array<i32>} : memref<4x8x1xf32, #tpu.memory_space<vmem>>, vector<4x8x1xf32>,
      %cst_42 = arith.constant 0.000000e+00 : f32
      %39 = vector.broadcast %cst_42 : f32 to vector<4x8x8xf32>
      %c0_43 = arith.constant 0 : index
      %c0_44 = arith.constant 0 : index
      %c0_45 = arith.constant 0 : index
      %40 = vector.load %arg10[%c0_43, %c0_44, %c0_45] : memref<4x8x8xf32, #tpu.memory_space<vmem>>, vector<4x8x8xf32>
      tpu.vector_store %arg10[%c0_43, %c0_44, %c0_45], %39 {strides = array<i32>} : memref<4x8x8xf32, #tpu.memory_space<vmem>>, vector<4x8x8xf32>,
    } else {
    }
    %c0 = arith.constant 0 : index
    %c0_1 = arith.constant 0 : index
    %c0_2 = arith.constant 0 : index
    %c0_3 = arith.constant 0 : index
    %3 = vector.load %arg3[%c0, %c0_1, %c0_2, %c0_3] : memref<1x4x8x8xf32, #tpu.memory_space<vmem>>, vector<1x4x8x8xf32>
    %4 = vector.shape_cast %3 : vector<1x4x8x8xf32> to vector<4x8x8xf32>
    %c0_4 = arith.constant 0 : index
    %c0_5 = arith.constant 0 : index
    %c0_6 = arith.constant 0 : index
    %c0_7 = arith.constant 0 : index
    %5 = vector.load %arg4[%c0_4, %c0_5, %c0_6, %c0_7] : memref<1x4x8x8xf32, #tpu.memory_space<vmem>>, vector<1x4x8x8xf32>
    %6 = vector.shape_cast %5 : vector<1x4x8x8xf32> to vector<4x8x8xf32>
    %c0_8 = arith.constant 0 : index
    %c0_9 = arith.constant 0 : index
    %c0_10 = arith.constant 0 : index
    %c0_11 = arith.constant 0 : index
    %7 = vector.load %arg5[%c0_8, %c0_9, %c0_10, %c0_11] : memref<1x4x8x8xf32, #tpu.memory_space<vmem>>, vector<1x4x8x8xf32>
    %8 = vector.shape_cast %7 : vector<1x4x8x8xf32> to vector<4x8x8xf32>
    "tpu.trace_start"() <{level = 10 : i32, message = "hqc,hkc->hqk"}> : () -> ()
    %cst = arith.constant dense<0.000000e+00> : vector<4x8x8xf32>
    %9 = tpu.matmul %4, %6, %cst {dimension_numbers = #tpu.dot_dimension_numbers<[2], [2], [1], [1], [0, 0, 0, 1, 1, 1], [0], [0]>} : vector<4x8x8xf32>, vector<4x8x8xf32>, vector<4x8x8xf32> -> vector<4x8x8xf32>
    "tpu.trace_stop"() : () -> ()
    %c0_12 = arith.constant 0 : index
    %c0_13 = arith.constant 0 : index
    %c0_14 = arith.constant 0 : index
    %10 = vector.load %arg8[%c0_12, %c0_13, %c0_14] : memref<4x8x1xf32, #tpu.memory_space<vmem>>, vector<4x8x1xf32>
    %cst_15 = arith.constant dense<0xFF800000> : vector<4x8xf32>
    %11 = vector.multi_reduction <maximumf>, %9, %cst_15 [2] : vector<4x8x8xf32> to vector<4x8xf32>
    %12 = vector.shape_cast %11 : vector<4x8xf32> to vector<4x8x1xf32>
    %13 = arith.maximumf %10, %12 : vector<4x8x1xf32>
    %14 = arith.subf %10, %13 : vector<4x8x1xf32>
    %15 = math.exp %14 : vector<4x8x1xf32>
    %16 = vector.broadcast %13 : vector<4x8x1xf32> to vector<4x8x8xf32>
    %17 = arith.subf %9, %16 : vector<4x8x8xf32>
    %18 = math.exp %17 : vector<4x8x8xf32>
    %c0_16 = arith.constant 0 : index
    %c0_17 = arith.constant 0 : index
    %c0_18 = arith.constant 0 : index
    %19 = vector.load %arg9[%c0_16, %c0_17, %c0_18] : memref<4x8x1xf32, #tpu.memory_space<vmem>>, vector<4x8x1xf32>
    %20 = arith.mulf %15, %19 : vector<4x8x1xf32>
    %cst_19 = arith.constant dense<0.000000e+00> : vector<4x8xf32>
    %21 = vector.multi_reduction <add>, %18, %cst_19 [2] : vector<4x8x8xf32> to vector<4x8xf32>
    %22 = vector.shape_cast %21 : vector<4x8xf32> to vector<4x8x1xf32>
    %23 = arith.addf %20, %22 : vector<4x8x1xf32>
    %c0_20 = arith.constant 0 : index
    %c0_21 = arith.constant 0 : index
    %c0_22 = arith.constant 0 : index
    %24 = vector.load %arg9[%c0_20, %c0_21, %c0_22] : memref<4x8x1xf32, #tpu.memory_space<vmem>>, vector<4x8x1xf32>
    tpu.vector_store %arg9[%c0_20, %c0_21, %c0_22], %23 {strides = array<i32>} : memref<4x8x1xf32, #tpu.memory_space<vmem>>, vector<4x8x1xf32>,
    %c0_23 = arith.constant 0 : index
    %c0_24 = arith.constant 0 : index
    %c0_25 = arith.constant 0 : index
    %25 = vector.load %arg10[%c0_23, %c0_24, %c0_25] : memref<4x8x8xf32, #tpu.memory_space<vmem>>, vector<4x8x8xf32>
    %26 = vector.broadcast %15 : vector<4x8x1xf32> to vector<4x8x8xf32>
    %27 = arith.mulf %26, %25 : vector<4x8x8xf32>
    "tpu.trace_start"() <{level = 10 : i32, message = "hqk,hkc->hqc"}> : () -> ()
    %cst_26 = arith.constant dense<0.000000e+00> : vector<4x8x8xf32>
    %28 = tpu.matmul %18, %8, %cst_26 {dimension_numbers = #tpu.dot_dimension_numbers<[2], [1], [1], [2], [0, 0, 0, 1, 1, 2], [0], [0]>} : vector<4x8x8xf32>, vector<4x8x8xf32>, vector<4x8x8xf32> -> vector<4x8x8xf32>
    "tpu.trace_stop"() : () -> ()
    %29 = arith.addf %27, %28 : vector<4x8x8xf32>
    %c0_27 = arith.constant 0 : index
    %c0_28 = arith.constant 0 : index
    %c0_29 = arith.constant 0 : index
    %30 = vector.load %arg10[%c0_27, %c0_28, %c0_29] : memref<4x8x8xf32, #tpu.memory_space<vmem>>, vector<4x8x8xf32>
    tpu.vector_store %arg10[%c0_27, %c0_28, %c0_29], %29 {strides = array<i32>} : memref<4x8x8xf32, #tpu.memory_space<vmem>>, vector<4x8x8xf32>,
    %c0_30 = arith.constant 0 : index
    %c0_31 = arith.constant 0 : index
    %c0_32 = arith.constant 0 : index
    %31 = vector.load %arg8[%c0_30, %c0_31, %c0_32] : memref<4x8x1xf32, #tpu.memory_space<vmem>>, vector<4x8x1xf32>
    tpu.vector_store %arg8[%c0_30, %c0_31, %c0_32], %13 {strides = array<i32>} : memref<4x8x1xf32, #tpu.memory_space<vmem>>, vector<4x8x1xf32>,
    %c1_i32 = arith.constant 1 : i32
    %32 = arith.cmpi eq, %arg2, %c1_i32 : i32
    %33 = arith.extui %32 : i1 to i32
    %c0_i32_33 = arith.constant 0 : i32
    %34 = arith.cmpi ne, %33, %c0_i32_33 : i32
    scf.if %34 {
      %cst_34 = arith.constant 0.000000e+00 : f32
      %35 = vector.broadcast %cst_34 : f32 to vector<8x32xf32>
      %c0_35 = arith.constant 0 : index
      %c0_36 = arith.constant 0 : index
      %c0_37 = arith.constant 0 : index
      %36 = vector.load %arg9[%c0_35, %c0_36, %c0_37] : memref<4x8x1xf32, #tpu.memory_space<vmem>>, vector<1x8x1xf32>
      %37 = vector.shape_cast %36 : vector<1x8x1xf32> to vector<8x1xf32>
      %38 = tpu.reciprocal %37 {approx = true} : vector<8x1xf32> -> vector<8x1xf32>
      %c0_38 = arith.constant 0 : index
      %c0_39 = arith.constant 0 : index
      %c0_40 = arith.constant 0 : index
      %39 = vector.load %arg9[%c0_38, %c0_39, %c0_40] : memref<4x8x1xf32, #tpu.memory_space<vmem>>, vector<1x8x1xf32>
      %40 = vector.shape_cast %39 : vector<1x8x1xf32> to vector<8x1xf32>
      %41 = arith.mulf %40, %38 : vector<8x1xf32>
      %cst_41 = arith.constant 2.000000e+00 : f32
      %42 = vector.broadcast %cst_41 : f32 to vector<8x1xf32>
      %43 = arith.subf %42, %41 : vector<8x1xf32>
      %44 = arith.mulf %38, %43 : vector<8x1xf32>
      %c0_42 = arith.constant 0 : index
      %c0_43 = arith.constant 0 : index
      %c0_44 = arith.constant 0 : index
      %45 = vector.load %arg10[%c0_42, %c0_43, %c0_44] : memref<4x8x8xf32, #tpu.memory_space<vmem>>, vector<1x8x8xf32>
      %46 = vector.shape_cast %45 : vector<1x8x8xf32> to vector<8x8xf32>
      %47 = vector.broadcast %44 : vector<8x1xf32> to vector<8x8xf32>
      %48 = arith.mulf %46, %47 : vector<8x8xf32>
      %c0_45 = arith.constant 0 : index
      %c0_46 = arith.constant 0 : index
      %c0_47 = arith.constant 0 : index
      %49 = vector.load %arg6[%c0_45, %c0_46, %c0_47] : memref<4x8x32xf32, #tpu.memory_space<vmem>>, vector<1x8x32xf32>
      %50 = vector.shape_cast %49 : vector<1x8x32xf32> to vector<8x32xf32>
      %cst_48 = arith.constant dense<0.000000e+00> : vector<8x32xf32>
      %51 = tpu.matmul %48, %50, %cst_48 {dimension_numbers = #tpu.dot_dimension_numbers<[1], [0], [0], [1], [0, 0, 1, 1], [], []>} : vector<8x8xf32>, vector<8x32xf32>, vector<8x32xf32> -> vector<8x32xf32>
      %52 = arith.addf %35, %51 : vector<8x32xf32>
      %c1 = arith.constant 1 : index
      %c0_49 = arith.constant 0 : index
      %c0_50 = arith.constant 0 : index
      %53 = vector.load %arg9[%c1, %c0_49, %c0_50] : memref<4x8x1xf32, #tpu.memory_space<vmem>>, vector<1x8x1xf32>
      %54 = vector.shape_cast %53 : vector<1x8x1xf32> to vector<8x1xf32>
      %55 = tpu.reciprocal %54 {approx = true} : vector<8x1xf32> -> vector<8x1xf32>
      %c1_51 = arith.constant 1 : index
      %c0_52 = arith.constant 0 : index
      %c0_53 = arith.constant 0 : index
      %56 = vector.load %arg9[%c1_51, %c0_52, %c0_53] : memref<4x8x1xf32, #tpu.memory_space<vmem>>, vector<1x8x1xf32>
      %57 = vector.shape_cast %56 : vector<1x8x1xf32> to vector<8x1xf32>
      %58 = arith.mulf %57, %55 : vector<8x1xf32>
      %cst_54 = arith.constant 2.000000e+00 : f32
      %59 = vector.broadcast %cst_54 : f32 to vector<8x1xf32>
      %60 = arith.subf %59, %58 : vector<8x1xf32>
      %61 = arith.mulf %55, %60 : vector<8x1xf32>
      %c1_55 = arith.constant 1 : index
      %c0_56 = arith.constant 0 : index
      %c0_57 = arith.constant 0 : index
      %62 = vector.load %arg10[%c1_55, %c0_56, %c0_57] : memref<4x8x8xf32, #tpu.memory_space<vmem>>, vector<1x8x8xf32>
      %63 = vector.shape_cast %62 : vector<1x8x8xf32> to vector<8x8xf32>
      %64 = vector.broadcast %61 : vector<8x1xf32> to vector<8x8xf32>
      %65 = arith.mulf %63, %64 : vector<8x8xf32>
      %c1_58 = arith.constant 1 : index
      %c0_59 = arith.constant 0 : index
      %c0_60 = arith.constant 0 : index
      %66 = vector.load %arg6[%c1_58, %c0_59, %c0_60] : memref<4x8x32xf32, #tpu.memory_space<vmem>>, vector<1x8x32xf32>
      %67 = vector.shape_cast %66 : vector<1x8x32xf32> to vector<8x32xf32>
      %cst_61 = arith.constant dense<0.000000e+00> : vector<8x32xf32>
      %68 = tpu.matmul %65, %67, %cst_61 {dimension_numbers = #tpu.dot_dimension_numbers<[1], [0], [0], [1], [0, 0, 1, 1], [], []>} : vector<8x8xf32>, vector<8x32xf32>, vector<8x32xf32> -> vector<8x32xf32>
      %69 = arith.addf %52, %68 : vector<8x32xf32>
      %c2 = arith.constant 2 : index
      %c0_62 = arith.constant 0 : index
      %c0_63 = arith.constant 0 : index
      %70 = vector.load %arg9[%c2, %c0_62, %c0_63] : memref<4x8x1xf32, #tpu.memory_space<vmem>>, vector<1x8x1xf32>
      %71 = vector.shape_cast %70 : vector<1x8x1xf32> to vector<8x1xf32>
      %72 = tpu.reciprocal %71 {approx = true} : vector<8x1xf32> -> vector<8x1xf32>
      %c2_64 = arith.constant 2 : index
      %c0_65 = arith.constant 0 : index
      %c0_66 = arith.constant 0 : index
      %73 = vector.load %arg9[%c2_64, %c0_65, %c0_66] : memref<4x8x1xf32, #tpu.memory_space<vmem>>, vector<1x8x1xf32>
      %74 = vector.shape_cast %73 : vector<1x8x1xf32> to vector<8x1xf32>
      %75 = arith.mulf %74, %72 : vector<8x1xf32>
      %cst_67 = arith.constant 2.000000e+00 : f32
      %76 = vector.broadcast %cst_67 : f32 to vector<8x1xf32>
      %77 = arith.subf %76, %75 : vector<8x1xf32>
      %78 = arith.mulf %72, %77 : vector<8x1xf32>
      %c2_68 = arith.constant 2 : index
      %c0_69 = arith.constant 0 : index
      %c0_70 = arith.constant 0 : index
      %79 = vector.load %arg10[%c2_68, %c0_69, %c0_70] : memref<4x8x8xf32, #tpu.memory_space<vmem>>, vector<1x8x8xf32>
      %80 = vector.shape_cast %79 : vector<1x8x8xf32> to vector<8x8xf32>
      %81 = vector.broadcast %78 : vector<8x1xf32> to vector<8x8xf32>
      %82 = arith.mulf %80, %81 : vector<8x8xf32>
      %c2_71 = arith.constant 2 : index
      %c0_72 = arith.constant 0 : index
      %c0_73 = arith.constant 0 : index
      %83 = vector.load %arg6[%c2_71, %c0_72, %c0_73] : memref<4x8x32xf32, #tpu.memory_space<vmem>>, vector<1x8x32xf32>
      %84 = vector.shape_cast %83 : vector<1x8x32xf32> to vector<8x32xf32>
      %cst_74 = arith.constant dense<0.000000e+00> : vector<8x32xf32>
      %85 = tpu.matmul %82, %84, %cst_74 {dimension_numbers = #tpu.dot_dimension_numbers<[1], [0], [0], [1], [0, 0, 1, 1], [], []>} : vector<8x8xf32>, vector<8x32xf32>, vector<8x32xf32> -> vector<8x32xf32>
      %86 = arith.addf %69, %85 : vector<8x32xf32>
      %c3 = arith.constant 3 : index
      %c0_75 = arith.constant 0 : index
      %c0_76 = arith.constant 0 : index
      %87 = vector.load %arg9[%c3, %c0_75, %c0_76] : memref<4x8x1xf32, #tpu.memory_space<vmem>>, vector<1x8x1xf32>
      %88 = vector.shape_cast %87 : vector<1x8x1xf32> to vector<8x1xf32>
      %89 = tpu.reciprocal %88 {approx = true} : vector<8x1xf32> -> vector<8x1xf32>
      %c3_77 = arith.constant 3 : index
      %c0_78 = arith.constant 0 : index
      %c0_79 = arith.constant 0 : index
      %90 = vector.load %arg9[%c3_77, %c0_78, %c0_79] : memref<4x8x1xf32, #tpu.memory_space<vmem>>, vector<1x8x1xf32>
      %91 = vector.shape_cast %90 : vector<1x8x1xf32> to vector<8x1xf32>
      %92 = arith.mulf %91, %89 : vector<8x1xf32>
      %cst_80 = arith.constant 2.000000e+00 : f32
      %93 = vector.broadcast %cst_80 : f32 to vector<8x1xf32>
      %94 = arith.subf %93, %92 : vector<8x1xf32>
      %95 = arith.mulf %89, %94 : vector<8x1xf32>
      %c3_81 = arith.constant 3 : index
      %c0_82 = arith.constant 0 : index
      %c0_83 = arith.constant 0 : index
      %96 = vector.load %arg10[%c3_81, %c0_82, %c0_83] : memref<4x8x8xf32, #tpu.memory_space<vmem>>, vector<1x8x8xf32>
      %97 = vector.shape_cast %96 : vector<1x8x8xf32> to vector<8x8xf32>
      %98 = vector.broadcast %95 : vector<8x1xf32> to vector<8x8xf32>
      %99 = arith.mulf %97, %98 : vector<8x8xf32>
      %c3_84 = arith.constant 3 : index
      %c0_85 = arith.constant 0 : index
      %c0_86 = arith.constant 0 : index
      %100 = vector.load %arg6[%c3_84, %c0_85, %c0_86] : memref<4x8x32xf32, #tpu.memory_space<vmem>>, vector<1x8x32xf32>
      %101 = vector.shape_cast %100 : vector<1x8x32xf32> to vector<8x32xf32>
      %cst_87 = arith.constant dense<0.000000e+00> : vector<8x32xf32>
      %102 = tpu.matmul %99, %101, %cst_87 {dimension_numbers = #tpu.dot_dimension_numbers<[1], [0], [0], [1], [0, 0, 1, 1], [], []>} : vector<8x8xf32>, vector<8x32xf32>, vector<8x32xf32> -> vector<8x32xf32>
      %103 = arith.addf %86, %102 : vector<8x32xf32>
      %c0_88 = arith.constant 0 : index
      %c0_89 = arith.constant 0 : index
      %c0_90 = arith.constant 0 : index
      %104 = vector.load %arg7[%c0_88, %c0_89, %c0_90] : memref<1x8x32xf32, #tpu.memory_space<vmem>>, vector<1x8x32xf32>
      %105 = vector.shape_cast %104 : vector<1x8x32xf32> to vector<8x32xf32>
      %106 = vector.shape_cast %103 : vector<8x32xf32> to vector<1x8x32xf32>
      tpu.vector_store %arg7[%c0_88, %c0_89, %c0_90], %106 {strides = array<i32>} : memref<1x8x32xf32, #tpu.memory_space<vmem>>, vector<1x8x32xf32>,
    } else {
    }
    return
  }
  func.func @transform_0(%arg0: i32, %arg1: i32, %arg2: i32) -> (i32, i32, i32, i32) {
    %c0_i32 = arith.constant 0 : i32
    %c0_i32_0 = arith.constant 0 : i32
    %c0_i32_1 = arith.constant 0 : i32
    return %arg0, %c0_i32, %arg1, %c0_i32_0 : i32, i32, i32, i32
  }
  func.func @transform_1(%arg0: i32, %arg1: i32, %arg2: i32) -> (i32, i32, i32, i32) {
    %c0_i32 = arith.constant 0 : i32
    %c0_i32_0 = arith.constant 0 : i32
    %c0_i32_1 = arith.constant 0 : i32
    return %arg0, %c0_i32, %arg2, %c0_i32_0 : i32, i32, i32, i32
  }
  func.func @transform_2(%arg0: i32, %arg1: i32, %arg2: i32) -> (i32, i32, i32, i32) {
    %c0_i32 = arith.constant 0 : i32
    %c0_i32_0 = arith.constant 0 : i32
    %c0_i32_1 = arith.constant 0 : i32
    return %arg0, %c0_i32, %arg2, %c0_i32_0 : i32, i32, i32, i32
  }
  func.func @transform_3(%arg0: i32, %arg1: i32, %arg2: i32) -> (i32, i32, i32) {
    %c0_i32 = arith.constant 0 : i32
    %c0_i32_0 = arith.constant 0 : i32
    %c0_i32_1 = arith.constant 0 : i32
    %c0_i32_2 = arith.constant 0 : i32
    return %c0_i32, %c0_i32_0, %c0_i32_1 : i32, i32, i32
  }
  func.func @transform_4(%arg0: i32, %arg1: i32, %arg2: i32) -> (i32, i32, i32) {
    %c0_i32 = arith.constant 0 : i32
    %c0_i32_0 = arith.constant 0 : i32
    return %arg0, %arg1, %c0_i32 : i32, i32, i32
  }
}

</mosaic_0001>

<bundles_post_ra>
// kernel: tpu_custom_call.1
= control target key start
LH: loop header
LB: loop body
LE: loop exit
PB: predicated region body
PF: predicated region fallthrough
CT: control target
= control target key end

     0   :  { %9 = vsyncpa [#allocation9], 0  ;;  %s2425_s0 = inlined_call_operand.vmem [shape: f32[2,4,16,8], index: 0, kind: input, shape index: {}]   ;;  %s2426_s1 = inlined_call_operand.vmem [shape: f32[2,4,16,8], index: 1, kind: input, shape index: {}]   ;;  %s2427_s2 = inlined_call_operand.vmem [shape: f32[2,4,16,8], index: 2, kind: input, shape index: {}]   ;;  %s2428_s3 = inlined_call_operand.vmem [shape: f32[4,8,32], index: 3, kind: input, shape index: {}]   ;;  %s2429_s4 = inlined_call_operand.hbm [shape: f32[2,16,32], index: 4, kind: output, shape index: {}]  }
   0x1   :  { %11 = vsyncpa [#allocation9 + $0x1], 0  ;;  %s2104_s15 = smov 0   ;;  %s2106_s16 = smov 0  }
   0x2   :  { %s2108_s17 = smov 0   ;;  %s2110_s18 = smov 0  }
   0x3   :  { %s2112_s19 = smov 0   ;;  %s2114_s20 = smov 0  }
   0x4   :  { %s2116_s21 = smov 0   ;;  %s2118_s22 = smov 0  }
   0x5   :  { %s2120_s23 = smov 0   ;;  %s2122_s24 = smov 0  }
   0x6   :  { %s2124_s25 = smov 0   ;;  %s2126_s26 = smov 0  }
   0x7 LB: > { %2435 = sst [smem:[#allocation11_spill]] %s2024_s15  ;;  %s1670_s27 = sadd.s32 4294967295, %s2068_s26   ;;  %s2068_s26 = sphi %s2126_s26, %s17_s26   ;;  %s2064_s25 = sphi %s2124_s25, %s2459_s25   ;;  %s2060_s24 = sphi %s2122_s24, %s2458_s24   ;;  %s2056_s23 = sphi %s2120_s23, %s2457_s23   ;;  %s2052_s22 = sphi %s2118_s22, %s2456_s22   ;;  %s2048_s21 = sphi %s2116_s21, %s2455_s21   ;;  %s2044_s20 = sphi %s2114_s20, %s2454_s20   ;;  %s2040_s19 = sphi %s2112_s19, %s2453_s19   ;;  %s2036_s18 = sphi %s2110_s18, %s2452_s18   ;;  %s2032_s17 = sphi %s2108_s17, %s2451_s17   ;;  %s2028_s16 = sphi %s2106_s16, %s2450_s16   ;;  %s2024_s15 = sphi %s2104_s15, %s2449_s15  }
   0x8   : > { %s1671_s28 = sadd.s32 4294967294, %s2068_s26   ;;  %s29_s29 = sadd.s32 1, %s2056_s23 }
   0x9   : > { %p30_p0 = scmp.ge.s32.totalorder %s29_s29, 2  ;;  %s32_s30 = sadd.s32 1, %s2060_s24 }
   0xa   : > { %s36_s5 = sadd.s32 1, %s2064_s25  ;;  %p52_p1 = scmp.ne.s32.totalorder %s2040_s19, %s2036_s18 }
   0xb   : > { %s2461_s29 = smov (%p30_p0, %s29_s29), 0  ;;  %s2463_s30 = smov (!%p30_p0, %s32_s30), %s2060_s24 }
   0xc   : > { %2436 = sst [smem:[#allocation12_spill]] %s2461_s29  ;;  %s45_s6 = sadd.s32 1, %s2040_s19 }
   0xd   : > { %p53_p2 = scmp.eq.s32.totalorder %s2068_s26, 0  ;;  %p34_p3 = scmp.ge.s32.totalorder %s2463_s30, 2 }
   0xe   : > { %s69_s7 = ssub.s32 %s2056_s23, %s2461_s29  ;;  %p80_p5 = scmp.ne.s32.totalorder %s2032_s17, %s2028_s16 }
   0xf   : > { %p2181_p4 = por %p53_p2, %p52_p1  ;;  %s2465_s30 = smov (%p34_p3, %s2463_s30), 0 }
  0x10   : > { %2438 = sst [smem:[#allocation13_spill]] %s2465_s30  ;;  %s2467_s5 = smov (!%p34_p3, %s36_s5), %s2064_s25 }
  0x11   : > { %s41_s9 = ssub.s32 %s2060_s24, %s2465_s30  ;;  %p2192_p6 = por %p80_p5, %p53_p2 }
  0x12   : > { %p38_p7 = scmp.ge.s32.totalorder %s2467_s5, 2  ;;  %p161_p8 = scmp.eq.s32.totalorder %s1670_s27, 7 }
  0x13   : > { %p166_p9 = scmp.ne.s32.totalorder %s2036_s18, %s2024_s15  ;;  %p167_p10 = scmp.eq.s32.totalorder %s1671_s28, 7 }
  0x14   : > { %s2469_s5 = smov (%p38_p7, %s2467_s5), 0  ;;  %p2203_p11 = por %p161_p8, %p52_p1 }
  0x15   : > { %2440 = sst [smem:[#allocation14_spill]] %s2469_s5  ;;  %p2207_p12 = por %p167_p10, %p166_p9 }
  0x16   : > { %s40_s13 = ssub.s32 %s2064_s25, %s2469_s5  ;;  %s73_s14 = sadd.s32 1, %s2032_s17 }
  0x17   : > { %s2442_s12 = scalar_select %p2207_p12, 1, 0 }
  0x18   : > { %s42_s30 = sor.u32 %s41_s9, %s40_s13  ;;  %s70_s29 = sor.u32 %s69_s7, %s40_s13 }
  0x19   : > { %2443 = sst [smem:[#allocation15_spill]] %s2442_s12  ;;  %p43_p13 = scmp.eq.s32.totalorder %s42_s30, 0 }
  0x1a   : > { %p71_p0 = scmp.eq.s32.totalorder %s70_s29, 0  ;;  %p1673_p2 = scmp.ge.s32.totalorder %s2068_s26, 8 }
  0x1b   : > { %s2215_s27 = scalar_select %p43_p13, %s2040_s19, %s45_s6  }
  0x1c   : > { %s2218_s28 = scalar_select %p71_p0, %s2032_s17, %s73_s14  }
  0x1d   : > { %186 = sbr.rel (%p1673_p2) target bundleno = 60 (0x3c), region = 20 }
  0x24   : > { %189 = sbr.rel (!%p2181_p4) target bundleno = 44 (0x2c), region = 24  ;;  %s191_s12 = sand.u32 (%p2181_p4), 1, %s2040_s19  }
  0x25   : > { %s1675_s5 = sshll.u32 (%p2181_p4), %s2064_s25, 3  ;;  %s1674_s15 = sshll.u32 (%p2181_p4), %s191_s12, 5 }
  0x26   : > { %s195_s9 = sadd.s32 (%p2181_p4), %s2060_s24, %s1675_s5  ;;  %s193_s13 = scalar_lea.vmem (%p2181_p4), [#allocation5], %s1674_s15 }
  0x27   : > { %s1676_s7 = sshll.u32 (%p2181_p4), %s195_s9, 3 }
  0x28   : > { %s197_s6 = scalar_lea.vmem (%p2181_p4), %s2425_s0, %s1676_s7 }
  0x29   : > { %v231_v0 = vld [vmem:[%s197_s6] sm:$0xff] (%p2181_p4)  ;;  %v233_v1 = vld [vmem:[%s197_s6 + $0x10] sm:$0xff] (%p2181_p4) }
  0x2a   : > { %v235_v2 = vld [vmem:[%s197_s6 + $0x20] sm:$0xff] (%p2181_p4)  ;;  %232 = vst [vmem:[%s193_s13] sm:$0xff] (%p2181_p4), %v231_v0  ;;  %234 = vst [vmem:[%s193_s13 + $0x8] sm:$0xff] (%p2181_p4), %v233_v1  ;;  %v237_v3 = vld [vmem:[%s197_s6 + $0x30] sm:$0xff] (%p2181_p4) }
  0x2b   : > { %236 = vst [vmem:[%s193_s13 + $0x10] sm:$0xff] %v235_v2  ;;  %238 = vst [vmem:[%s193_s13 + $0x18] sm:$0xff] %v237_v3 }
  0x2c PF: > { %244 = sbr.rel (!%p2192_p6) target bundleno = 52 (0x34), region = 62  ;;  %s246_s5 = sand.u32 (%p2192_p6), 1, %s2032_s17  }
  0x2d   : > { %s1678_s8 = sshll.u32 (%p2192_p6), %s2064_s25, 3  ;;  %s1677_s12 = sshll.u32 (%p2192_p6), %s246_s5, 5 }
  0x2e   : > { %s250_s14 = sadd.s32 (%p2192_p6), %s2056_s23, %s1678_s8  ;;  %s248_s29 = scalar_lea.vmem (%p2192_p6), [#allocation6], %s1677_s12 }
  0x2f   : > { %s1679_s9 = sshll.u32 (%p2192_p6), %s250_s14, 3 }
  0x30   : > { %s252_s15 = scalar_lea.vmem (%p2192_p6), %s2426_s1, %s1679_s9 }
  0x31   : > { %v286_v4 = vld [vmem:[%s252_s15] sm:$0xff] (%p2192_p6)  ;;  %v288_v5 = vld [vmem:[%s252_s15 + $0x10] sm:$0xff] (%p2192_p6) }
  0x32   : > { %v290_v6 = vld [vmem:[%s252_s15 + $0x20] sm:$0xff] (%p2192_p6)  ;;  %287 = vst [vmem:[%s248_s29] sm:$0xff] (%p2192_p6), %v286_v4  ;;  %289 = vst [vmem:[%s248_s29 + $0x8] sm:$0xff] (%p2192_p6), %v288_v5  ;;  %v292_v7 = vld [vmem:[%s252_s15 + $0x30] sm:$0xff] (%p2192_p6) }
  0x33   : > { %291 = vst [vmem:[%s248_s29 + $0x10] sm:$0xff] %v290_v6  ;;  %293 = vst [vmem:[%s248_s29 + $0x18] sm:$0xff] %v292_v7 }
  0x34 PF: > { %299 = sbr.rel (!%p2192_p6) target bundleno = 60 (0x3c), region = 100  ;;  %s301_s6 = sand.u32 (%p2192_p6), 1, %s2032_s17  }
  0x35   : > { %s1681_s13 = sshll.u32 (%p2192_p6), %s2064_s25, 3  ;;  %s1680_s5 = sshll.u32 (%p2192_p6), %s301_s6, 5 }
  0x36   : > { %s305_s8 = sadd.s32 (%p2192_p6), %s2056_s23, %s1681_s13  ;;  %s303_s30 = scalar_lea.vmem (%p2192_p6), [#allocation7], %s1680_s5 }
  0x37   : > { %s1682_s14 = sshll.u32 (%p2192_p6), %s305_s8, 3 }
  0x38   : > { %s307_s12 = scalar_lea.vmem (%p2192_p6), %s2427_s2, %s1682_s14 }
  0x39   : > { %v341_v8 = vld [vmem:[%s307_s12] sm:$0xff] (%p2192_p6)  ;;  %v343_v9 = vld [vmem:[%s307_s12 + $0x10] sm:$0xff] (%p2192_p6) }
  0x3a   : > { %v345_v10 = vld [vmem:[%s307_s12 + $0x20] sm:$0xff] (%p2192_p6)  ;;  %342 = vst [vmem:[%s303_s30] sm:$0xff] (%p2192_p6), %v341_v8  ;;  %344 = vst [vmem:[%s303_s30 + $0x8] sm:$0xff] (%p2192_p6), %v343_v9  ;;  %v347_v11 = vld [vmem:[%s307_s12 + $0x30] sm:$0xff] (%p2192_p6) }
  0x3b   : > { %346 = vst [vmem:[%s303_s30 + $0x10] sm:$0xff] %v345_v10  ;;  %348 = vst [vmem:[%s303_s30 + $0x18] sm:$0xff] %v347_v11 }
  0x3c PF: > { %p1683_p1 = scmp.ge.s32.totalorder %s2068_s26, 1  ;;  %p353_p3 = scmp.lt.s32.totalorder %s2068_s26, 9 }
  0x3e   : > { %p354_p4 = pnand %p1683_p1, %p353_p3 }
  0x3f   : > { %s2248_s10 = sand.u32 (!%p354_p4), 1, %s2036_s18   ;;  %s367_s15 = sand.u32 (!%p354_p4), 1, %s2028_s16  }
  0x40   : > { %357 = sbr.rel (%p354_p4) target bundleno = 1185 (0x4a1), region = 138  ;;  %s1684_s29 = sshll.u32 (!%p354_p4), %s2248_s10, 5 }
  0x41   : > { %s1685_s6 = sshll.u32 (!%p354_p4), %s367_s15, 5  ;;  %s1687_s13 = sshll.u32 (!%p354_p4), %s2248_s10, 3 }
  0x42   : > { %s2253_s5 = scalar_lea.vmem (!%p354_p4), [#allocation5], %s1684_s29  ;;  %s2255_s8 = scalar_lea.vmem (!%p354_p4), [#allocation6], %s1685_s6 }
  0x43   : > { %s2257_s14 = scalar_lea.vmem (!%p354_p4), [#allocation7], %s1685_s6  ;;  %s2259_s9 = scalar_lea.vmem (!%p354_p4), [#allocation8], %s1687_s13 }
  0x44   : > { %p1688_p5 = scmp.ne.s32.totalorder (!%p354_p4), %s2044_s20, 0 }
  0x47   : > { %410 = sbr.rel (%p1688_p5) target bundleno = 78 (0x4e), region = 154  ;;  %vm411_vm0 = vcmask (!%p1688_p5), 7168   ;;  %vm420_vm1 = vcmask (!%p1688_p5), 64512   ;;  %v2070_v12 = vmov (!%p1688_p5), -inf   ;;  %v2071_v13 = vmov (!%p1688_p5), 0.0  }
  0x48   : > { %412 = vst.msk [vmem:[#allocation2] sm:$0xff] (!%p1688_p5), %vm411_vm0, %v2070_v12  ;;  %413 = vst.msk [vmem:[#allocation2 + $0x8] sm:$0xff] (!%p1688_p5), %vm411_vm0, %v2070_v12 }
  0x49   : > { %414 = vst.msk [vmem:[#allocation2 + $0x10] sm:$0xff] (!%p1688_p5), %vm411_vm0, %v2070_v12  ;;  %415 = vst.msk [vmem:[#allocation2 + $0x18] sm:$0xff] (!%p1688_p5), %vm411_vm0, %v2070_v12 }
  0x4a   : > { %416 = vst.msk [vmem:[#allocation3] sm:$0xff] (!%p1688_p5), %vm411_vm0, %v2071_v13  ;;  %417 = vst.msk [vmem:[#allocation3 + $0x8] sm:$0xff] (!%p1688_p5), %vm411_vm0, %v2071_v13 }
  0x4b   : > { %418 = vst.msk [vmem:[#allocation3 + $0x10] sm:$0xff] (!%p1688_p5), %vm411_vm0, %v2071_v13  ;;  %419 = vst.msk [vmem:[#allocation3 + $0x18] sm:$0xff] (!%p1688_p5), %vm411_vm0, %v2071_v13 }
  0x4c   : > { %421 = vst.msk [vmem:[#allocation4] sm:$0xff] (!%p1688_p5), %vm420_vm1, %v2071_v13  ;;  %422 = vst.msk [vmem:[#allocation4 + $0x8] sm:$0xff] (!%p1688_p5), %vm420_vm1, %v2071_v13 }
  0x4d   : > { %423 = vst.msk [vmem:[#allocation4 + $0x10] sm:$0xff] (!%p1688_p5), %vm420_vm1, %v2071_v13  ;;  %424 = vst.msk [vmem:[#allocation4 + $0x18] sm:$0xff] (!%p1688_p5), %vm420_vm1, %v2071_v13 }
  0x4e PF: > { %v429_v14 = vld [vmem:[%s2255_s8] sm:$0xff]  ;;  %vm437_vm2 = vcmask 64512   ;;  %v430_v15 = vld [vmem:[%s2255_s8 + $0x8] sm:$0xff]  ;;  %v2072_v16 = vmov 0.0   ;;  %vm2073_vm3 = vmmov 0   ;;  %v431_v19 = vld [vmem:[%s2255_s8 + $0x10] sm:$0xff] }
  0x4f   : > { %1738 = vmatprep.subr.mxu0 %v2072_v16  ;;  %1740 = vmatprep.mubr.msk.f32.mxu0 %vm2073_vm3, %v2072_v16  ;;  %v425_v17 = vld [vmem:[%s2253_s5] sm:$0xff]  ;;  %v426_v18 = vld [vmem:[%s2253_s5 + $0x8] sm:$0xff]  ;;  %v432_v20 = vld [vmem:[%s2255_s8 + $0x18] sm:$0xff]  ;;  %v2074_v35 = vmov 0   ;;  %vm830_vm4 = vcmask 7168   ;;  %p1701_p6 = scmp.ne.s32.totalorder %s2044_s20, 1 }
  0x50   : > { %1739 = vmatpush3.xpose.msk.msra.mxu0 %vm437_vm2, %v429_v14  ;;  %1743 = vmatprep.subr.mxu1 %v2072_v16  ;;  %v427_v21 = vld [vmem:[%s2253_s5 + $0x10] sm:$0xff]  ;;  %v428_v22 = vld [vmem:[%s2253_s5 + $0x18] sm:$0xff]  ;;  %v742_v36 = vld [vmem:[#allocation2] sm:$0xff]  ;;  %vm2077_vm5 = vmmov (!%p1701_p6), 0   ;;  %vm1526_vm6 = vcmask (!%p1701_p6), 261120  }
  0x51   : > { %1744 = vmatpush3.xpose.msk.msra.mxu1 %vm437_vm2, %v430_v15  ;;  %1745 = vmatprep.mubr.msk.f32.mxu1 %vm2073_vm3, %v2072_v16  ;;  %v2300_v39 = vld [vmem:[#allocation2 + $0x8] sm:$0xff]  ;;  %v744_v40 = vld [vmem:[#allocation2 + $0x10] sm:$0xff]  ;;  %v2304_v47 = vld [vmem:[#allocation2 + $0x18] sm:$0xff] }
  0x52   : > { %1748 = vmatprep.subr.mxu0 %v2072_v16  ;;  %1753 = vmatprep.subr.mxu1 %v2072_v16  ;;  %v433_v53 = vld [vmem:[%s2257_s14] sm:$0xff]  ;;  %v434_v55 = vld [vmem:[%s2257_s14 + $0x8] sm:$0xff]  ;;  %v435_v3 = vld [vmem:[%s2257_s14 + $0x10] sm:$0xff] }
  0x53   : > { %1741 = vmatmul.mubr.msk.f32.vlgmr.msra.gmra.mrb[0].mxu0 %vm437_vm2, %v425_v17  ;;  %1914 = vset.pattern.permute.xlu0 %v2074_v35  ;;  %v436_v7 = vld [vmem:[%s2257_s14 + $0x18] sm:$0xff] }
  0x54   : > { %1746 = vmatmul.mubr.msk.f32.vlgmr.msra.gmra.mrb[0].mxu1 %vm437_vm2, %v426_v18  ;;  %1749 = vmatpush3.xpose.msk.msra.mxu0 %vm437_vm2, %v431_v19 }
  0x55   : > { %1750 = vmatprep.mubr.msk.f32.mxu0 %vm2073_vm3, %v2072_v16  ;;  %1754 = vmatpush3.xpose.msk.msra.mxu1 %vm437_vm2, %v432_v20 }
  0x56   : > { %1755 = vmatprep.mubr.msk.f32.mxu1 %vm2073_vm3, %v2072_v16  ;;  %1758 = vmatprep.subr.mxu0 %v2072_v16 }
  0x57   : > { %1751 = vmatmul.mubr.msk.f32.vlgmr.msra.gmra.mrb[2].mxu0 %vm437_vm2, %v427_v21  ;;  %1763 = vmatprep.subr.mxu1 %v2072_v16  ;;  %v806_v21 = vld [vmem:[#allocation3] sm:$0xff] }
  0x58   : > { %1756 = vmatmul.mubr.msk.f32.vlgmr.msra.gmra.mrb[2].mxu1 %vm437_vm2, %v428_v22  ;;  %1760 = vmatprep.mubr.msk.f32.mxu0 %vm2073_vm3, %v2072_v16 }
  0x59   : > { %1765 = vmatprep.mubr.msk.f32.mxu1 %vm2073_vm3, %v2072_v16  ;;  %1915 = vset.pattern.permute.xlu1 %v2074_v35 }
  0x5a   : > { %1759 = vmatpush3.msra.mxu0 %v433_v53  ;;  %1764 = vmatpush3.msra.mxu1 %v434_v55 }
  0x5b   : > { %1768 = vmatprep.subr.mxu0 %v2072_v16  ;;  %1773 = vmatprep.subr.mxu1 %v2072_v16 }
 0x126   : > { %v510_v23 = vpop.f32.mrb[0].mxu0 }
 0x127   : > { %v1742_v24 = vpop.f32.mrb[1].mxu0  ;;  %v746_v25 = vsel %vm437_vm2, %v510_v23, -inf  ;;  %v586_v26 = vpop.f32.mrb[0].mxu1 }
 0x128   : > { %747 = vmax.xlane.f32.xlu0 %v746_v25  ;;  %v1747_v27 = vpop.f32.mrb[1].mxu1  ;;  %v749_v28 = vsel %vm437_vm2, %v586_v26, -inf  ;;  %v807_v24 = vld [vmem:[#allocation3 + $0x8] sm:$0xff] }
 0x12a   : > { %v662_v29 = vpop.f32.mrb[2].mxu0 }
 0x12b   : > { %v1752_v30 = vpop.f32.mrb[3].mxu0  ;;  %v752_v31 = vsel %vm437_vm2, %v662_v29, -inf  ;;  %v738_v32 = vpop.f32.mrb[2].mxu1 }
 0x12c   : > { %750 = vmax.xlane.f32.xlu0 %v749_v28  ;;  %753 = vmax.xlane.f32.xlu1 %v752_v31  ;;  %v1757_v33 = vpop.f32.mrb[3].mxu1  ;;  %v755_v34 = vsel %vm437_vm2, %v738_v32, -inf  ;;  %v808_v30 = vld [vmem:[#allocation3 + $0x10] sm:$0xff] }
 0x12d   : > { %v809_v33 = vld [vmem:[#allocation3 + $0x18] sm:$0xff] }
 0x130   : > { %756 = vmax.xlane.f32.xlu1 %v755_v34 }
 0x1b5   : > { %v748_v37 = vpop.xlane.xlu0 %747 }
 0x1b6   : > { %v758_v38 = vmax.f32 %v742_v36, %v748_v37 }
 0x1b8   : > { %v762_v41 = vsub.f32 %v742_v36, %v758_v38  ;;  %1163 = vst.msk [vmem:[#allocation2] sm:$0xff] %vm830_vm4, %v758_v38  ;;  %776 = vperm.xlu0 %1914, %v758_v38   ;;  %v835_v38 = vld [vmem:[#allocation4] sm:$0xff] }
 0x1b9   : > { %v751_v42 = vpop.xlane.xlu0 %750  ;;  %v754_v43 = vpop.xlane.xlu1 %753 }
 0x1ba   : > { %v766_v44 = vmul.f32 1.442695, %v762_v41  ;;  %v759_v45 = vmax.f32 %v2300_v39, %v751_v42  ;;  %v760_v46 = vmax.f32 %v744_v40, %v754_v43 }
 0x1bc   : > { %1916 = vpow2.f32 %v766_v44  ;;  %v763_v48 = vsub.f32 %v2300_v39, %v759_v45  ;;  %1164 = vst.msk [vmem:[#allocation2 + $0x8] sm:$0xff] %vm830_vm4, %v759_v45  ;;  %781 = vperm.xlu1 %1915, %v759_v45   ;;  %v764_v49 = vsub.f32 %v744_v40, %v760_v46  ;;  %1165 = vst.msk [vmem:[#allocation2 + $0x10] sm:$0xff] %vm830_vm4, %v760_v46  ;;  %v836_v40 = vld [vmem:[#allocation4 + $0x8] sm:$0xff] }
 0x1bd   : > { %v757_v50 = vpop.xlane.xlu1 %756 }
 0x1be   : > { %v761_v51 = vmax.f32 %v2304_v47, %v757_v50  ;;  %v770_v9 = vmul.f32 1.442695, %v764_v49  ;;  %v768_v13 = vmul.f32 1.442695, %v763_v48 }
 0x1c0   : > { %786 = vperm.xlu1 %1915, %v760_v46   ;;  %v765_v52 = vsub.f32 %v2304_v47, %v761_v51  ;;  %1166 = vst.msk [vmem:[#allocation2 + $0x18] sm:$0xff] %vm830_vm4, %v761_v51  ;;  %v837_v46 = vld [vmem:[#allocation4 + $0x10] sm:$0xff] }
 0x1c4   : > { %791 = vperm.xlu1 %1915, %v761_v51   ;;  %v838_v51 = vld [vmem:[#allocation4 + $0x18] sm:$0xff] }
 0x1c6   : > { %v1917_v54 = vpop.eup %1916 }
 0x1c7   : > { %v810_v22 = vmul.f32 %v1917_v54, %v806_v21 }
 0x1c8   : > { %841 = vperm.xlu1 %1915, %v1917_v54  }
 0x237   : > { %v777_v56 = vpop.permute.xlu0 %776 }
 0x238   : > { %v794_v57 = vsub.f32 %v510_v23, %v777_v56 }
 0x23a   : > { %v798_v58 = vmul.f32 1.442695, %v794_v57 }
 0x23b   : > { %v782_v59 = vpop.permute.xlu1 %781 }
 0x23c   : > { %1918 = vpow2.f32 %v798_v58  ;;  %v795_v60 = vsub.f32 %v586_v26, %v782_v59 }
 0x23e   : > { %v800_v61 = vmul.f32 1.442695, %v795_v60 }
 0x23f   : > { %v787_v62 = vpop.permute.xlu1 %786 }
 0x240   : > { %1920 = vpow2.f32 %v800_v61  ;;  %v796_v63 = vsub.f32 %v662_v29, %v787_v62 }
 0x242   : > { %v802_v0 = vmul.f32 1.442695, %v796_v63  ;;  %v2075_v63 = vmov (!%p1701_p6), 0  }
 0x243   : > { %v792_v1 = vpop.permute.xlu1 %791 }
 0x244   : > { %1922 = vpow2.f32 %v802_v0  ;;  %v797_v2 = vsub.f32 %v738_v32, %v792_v1 }
 0x246   : > { %v1919_v4 = vpop.eup %1918  ;;  %v804_v5 = vmul.f32 1.442695, %v797_v2 }
 0x247   : > { %1761 = vmatmul.mubr.msk.f32.vlgmr.msra.gmra.mrb[4].mxu0 %vm437_vm2, %v1919_v4  ;;  %v814_v6 = vsel %vm437_vm2, %v1919_v4, 0.0  ;;  %v842_v20 = vpop.permute.xlu1 %841 }
 0x248   : > { %1924 = vpow2.f32 %v804_v5  ;;  %815 = vadd.xlane.f32.xlu1 %v814_v6  ;;  %1769 = vmatpush3.msra.mxu0 %v435_v3  ;;  %v859_v39 = vmul.f32 %v842_v20, %v835_v38 }
 0x249   : > { %1770 = vmatprep.mubr.msk.f32.mxu0 %vm2073_vm3, %v2072_v16  ;;  %1926 = vpow2.f32 %v770_v9 }
 0x24a   : > { %v1921_v8 = vpop.eup %1920  ;;  %1928 = vpow2.f32 %v768_v13 }
 0x24b   : > { %1766 = vmatmul.mubr.msk.f32.vlgmr.msra.gmra.mrb[4].mxu1 %vm437_vm2, %v1921_v8  ;;  %v817_v10 = vsel %vm437_vm2, %v1921_v8, 0.0 }
 0x24c   : > { %818 = vadd.xlane.f32.xlu0 %v817_v10  ;;  %1774 = vmatpush3.msra.mxu1 %v436_v7 }
 0x24d   : > { %1775 = vmatprep.mubr.msk.f32.mxu1 %vm2073_vm3, %v2072_v16  ;;  %v772_v16 = vmul.f32 1.442695, %v765_v52 }
 0x24e   : > { %v1923_v11 = vpop.eup %1922 }
 0x24f   : > { %1771 = vmatmul.mubr.msk.f32.vlgmr.msra.gmra.mrb[6].mxu0 %vm437_vm2, %v1923_v11  ;;  %v820_v17 = vsel %vm437_vm2, %v1923_v11, 0.0  ;;  %1930 = vpow2.f32 %v772_v16 }
 0x252   : > { %v1925_v12 = vpop.eup %1924 }
 0x253   : > { %1776 = vmatmul.mubr.msk.f32.vlgmr.msra.gmra.mrb[6].mxu1 %vm437_vm2, %v1925_v12  ;;  %v1927_v14 = vpop.eup %1926  ;;  %v823_v18 = vsel %vm437_vm2, %v1925_v12, 0.0 }
 0x254   : > { %v1929_v15 = vpop.eup %1928  ;;  %v812_v31 = vmul.f32 %v1927_v14, %v808_v30 }
 0x255   : > { %v811_v26 = vmul.f32 %v1929_v15, %v807_v24 }
 0x259   : > { %851 = vperm.xlu1 %1915, %v1927_v14   ;;  %v1931_v19 = vpop.eup %1930 }
 0x25a   : > { %v813_v35 = vmul.f32 %v1931_v19, %v809_v33 }
 0x262   : > { %846 = vperm.xlu0 %1914, %v1929_v15  }
 0x266   : > { %1932 = vset.pattern.permute.xlu0 (!%p1701_p6), %v2075_v63 }
 0x27d   : > { %821 = vadd.xlane.f32.xlu1 %v820_v17  ;;  %v2076_v17 = vmov (!%p1701_p6), 0.0  }
 0x27e   : > { %1778 = vmatprep.subr.mxu1 (!%p1701_p6), %v2076_v17  ;;  %1780 = vmatprep.mubr.msk.f32.mxu1 (!%p1701_p6), %vm2077_vm5, %v2076_v17 }
 0x27f   : > { %1788 = vmatprep.subr.mxu0 (!%p1701_p6), %v2076_v17  ;;  %1790 = vmatprep.mubr.msk.f32.mxu0 (!%p1701_p6), %vm2077_vm5, %v2076_v17 }
 0x281   : > { %824 = vadd.xlane.f32.xlu1 %v823_v18  ;;  %v1702_v18 = vld [vmem:[%s2428_s3 + $0x8] sm:$0xff] (!%p1701_p6) }
 0x282   : > { %1779 = vmatpush3.msra.mxu1 (!%p1701_p6), %v1702_v18 }
 0x283   : > { %1783 = vmatprep.subr.mxu1 (!%p1701_p6), %v2076_v17 }
 0x292   : > { %856 = vperm.xlu1 %1915, %v1931_v19   ;;  %v1705_v19 = vld [vmem:[%s2428_s3 + $0x10] sm:$0xff] (!%p1701_p6) }
 0x293   : > { %1789 = vmatpush3.msra.mxu0 (!%p1701_p6), %v1705_v19 }
 0x294   : > { %1793 = vmatprep.subr.mxu0 (!%p1701_p6), %v2076_v17 }
 0x296   : > { %1933 = vset.pattern.permute.xlu1 (!%p1701_p6), %v2075_v63 }
 0x2d5   : > { %v816_v23 = vpop.xlane.xlu1 %815 }
 0x2d6   : > { %v826_v25 = vadd.f32 %v816_v23, %v810_v22  ;;  %v1183_v23 = vld [vmem:[%s2428_s3] sm:$0xff] (!%p1701_p6) }
 0x2d8   : > { %831 = vst.msk [vmem:[#allocation3] sm:$0xff] %vm830_vm4, %v826_v25 }
 0x2d9   : > { %v819_v27 = vpop.xlane.xlu0 %818  ;;  %v852_v29 = vpop.permute.xlu1 %851 }
 0x2da   : > { %v827_v28 = vadd.f32 %v819_v27, %v811_v26  ;;  %v861_v50 = vmul.f32 %v852_v29, %v837_v46  ;;  %v1707_v29 = vld [vmem:[%s2428_s3 + $0x18] sm:$0xff] (!%p1701_p6) }
 0x2dc   : > { %832 = vst.msk [vmem:[#allocation3 + $0x8] sm:$0xff] %vm830_vm4, %v827_v28 }
 0x2df   : > { %v1171_v62 = vld [vmem:[#allocation3] sm:$0xff] (!%p1701_p6) }
 0x2e1   : > { %v847_v41 = vpop.permute.xlu0 %846 }
 0x2e2   : > { %v860_v45 = vmul.f32 %v847_v41, %v836_v40 }
 0x2e3   : > { %v1185_v60 = vld [vmem:[#allocation3 + $0x8] sm:$0xff] (!%p1701_p6) }
 0x2e4   : > { %1934 = vrcp.f32 (!%p1701_p6), %v1185_v60 }
 0x2ee   : > { %v1935_v1 = vpop.eup (!%p1701_p6), %1934 }
 0x2ef   : > { %v1187_v3 = vmul.f32 (!%p1701_p6), %v1935_v1, %v1185_v60 }
 0x2f1   : > { %v1188_v7 = vsub.f32 (!%p1701_p6), 2.0, %v1187_v3 }
 0x2f3   : > { %v1189_v11 = vmul.f32 (!%p1701_p6), %v1935_v1, %v1188_v7 }
 0x2f5   : > { %1194 = vperm.xlu0 (!%p1701_p6), %1932, %v1189_v11  }
 0x30a   : > { %v822_v32 = vpop.xlane.xlu1 %821 }
 0x30b   : > { %v828_v34 = vadd.f32 %v822_v32, %v812_v31 }
 0x30d   : > { %833 = vst.msk [vmem:[#allocation3 + $0x10] sm:$0xff] %vm830_vm4, %v828_v34 }
 0x30e   : > { %v825_v36 = vpop.xlane.xlu1 %824 }
 0x30f   : > { %v829_v37 = vadd.f32 %v825_v36, %v813_v35 }
 0x311   : > { %834 = vst.msk [vmem:[#allocation3 + $0x18] sm:$0xff] %vm830_vm4, %v829_v37 }
 0x312   : > { %v857_v52 = vpop.permute.xlu1 %856 }
 0x313   : > { %v862_v56 = vmul.f32 %v857_v52, %v838_v51 }
 0x314   : > { %v1347_v61 = vld [vmem:[#allocation3 + $0x10] sm:$0xff] (!%p1701_p6) }
 0x315   : > { %1936 = vrcp.f32 (!%p1701_p6), %v1347_v61 }
 0x316   : > { %1938 = vrcp.f32 (!%p1701_p6), %v1171_v62 }
 0x318   : > { %v1437_v0 = vld [vmem:[#allocation3 + $0x18] sm:$0xff] (!%p1701_p6) }
 0x319   : > { %1940 = vrcp.f32 (!%p1701_p6), %v1437_v0 }
 0x31a   : > { %v932_v42 = vpop.f32.mrb[4].mxu0 }
 0x31b   : > { %v1155_v43 = vadd.f32 %v932_v42, %v859_v39  ;;  %v1762_v44 = vpop.f32.mrb[5].mxu0 }
 0x31d   : > { %1159 = vst.msk [vmem:[#allocation4] sm:$0xff] %vm437_vm2, %v1155_v43 }
 0x31e   : > { %v1005_v47 = vpop.f32.mrb[4].mxu1 }
 0x31f   : > { %v1156_v48 = vadd.f32 %v1005_v47, %v860_v45  ;;  %v1767_v49 = vpop.f32.mrb[5].mxu1  ;;  %v1937_v2 = vpop.eup (!%p1701_p6), %1936 }
 0x320   : > { %v1939_v4 = vpop.eup (!%p1701_p6), %1938  ;;  %v1349_v5 = vmul.f32 (!%p1701_p6), %v1937_v2, %v1347_v61 }
 0x321   : > { %1160 = vst.msk [vmem:[#allocation4 + $0x8] sm:$0xff] %vm437_vm2, %v1156_v48  ;;  %v1173_v8 = vmul.f32 (!%p1701_p6), %v1939_v4, %v1171_v62 }
 0x322   : > { %v1078_v53 = vpop.f32.mrb[6].mxu0  ;;  %v1350_v9 = vsub.f32 (!%p1701_p6), 2.0, %v1349_v5 }
 0x323   : > { %v1157_v54 = vadd.f32 %v1078_v53, %v861_v50  ;;  %v1772_v55 = vpop.f32.mrb[7].mxu0  ;;  %1170 = sbr.rel (%p1701_p6) target bundleno = 1159 (0x487), region = 158  ;;  %v1941_v6 = vpop.eup (!%p1701_p6), %1940  ;;  %v1174_v12 = vsub.f32 (!%p1701_p6), 2.0, %v1173_v8 }
 0x324   : > { %v1439_v10 = vmul.f32 (!%p1701_p6), %v1941_v6, %v1437_v0  ;;  %v1351_v14 = vmul.f32 (!%p1701_p6), %v1937_v2, %v1350_v9  ;;  %v1176_v26 = vld [vmem:[#allocation4] sm:$0xff] (!%p1701_p6) }
 0x325   : > { %1161 = vst.msk [vmem:[#allocation4 + $0x10] sm:$0xff] %vm437_vm2, %v1157_v54  ;;  %v1175_v15 = vmul.f32 (!%p1701_p6), %v1939_v4, %v1174_v12 }
 0x326   : > { %v1151_v57 = vpop.f32.mrb[6].mxu1  ;;  %v1440_v13 = vsub.f32 (!%p1701_p6), 2.0, %v1439_v10  ;;  %1356 = vperm.xlu0 (!%p1701_p6), %1932, %v1351_v14  }
 0x327   : > { %v1158_v58 = vadd.f32 %v1151_v57, %v862_v56  ;;  %v1777_v59 = vpop.f32.mrb[7].mxu1  ;;  %1179 = vperm.xlu1 (!%p1701_p6), %1933, %v1175_v15  }
 0x328   : > { %v1441_v16 = vmul.f32 (!%p1701_p6), %v1941_v6, %v1440_v13  ;;  %v1191_v20 = vld [vmem:[#allocation4 + $0x8] sm:$0xff] (!%p1701_p6) }
 0x329   : > { %1162 = vst.msk [vmem:[#allocation4 + $0x18] sm:$0xff] %vm437_vm2, %v1158_v58 }
 0x32b   : > { %1446 = vperm.xlu1 %1933, %v1441_v16  }
 0x32c   : > { %v1353_v24 = vld [vmem:[#allocation4 + $0x10] sm:$0xff] }
 0x330   : > { %v1443_v31 = vld [vmem:[#allocation4 + $0x18] sm:$0xff] }
 0x374   : > { %v1195_v21 = vpop.permute.xlu0 %1194 }
 0x375   : > { %v1197_v22 = vmul.f32 %v1195_v21, %v1191_v20 }
 0x377   : > { %1781 = vmatmul.mubr.msk.f32.vlgmr.msra.gmra.mrb[0].mxu1 %vm437_vm2, %v1197_v22 }
 0x378   : > { %1784 = vmatpush3.msra.mxu1 %v1183_v23  ;;  %1785 = vmatprep.mubr.msk.f32.mxu1 %vm2077_vm5, %v2076_v17 }
 0x3a5   : > { %v1357_v25 = vpop.permute.xlu0 %1356 }
 0x3a6   : > { %v1180_v27 = vpop.permute.xlu1 %1179  ;;  %v1359_v28 = vmul.f32 %v1357_v25, %v1353_v24 }
 0x3a7   : > { %v1182_v30 = vmul.f32 %v1180_v27, %v1176_v26 }
 0x3a8   : > { %1791 = vmatmul.mubr.msk.f32.vlgmr.msra.gmra.mrb[0].mxu0 %vm437_vm2, %v1359_v28 }
 0x3a9   : > { %1794 = vmatpush3.msra.mxu0 %v1707_v29  ;;  %1795 = vmatprep.mubr.msk.f32.mxu0 %vm2077_vm5, %v2076_v17 }
 0x3aa   : > { %v1447_v32 = vpop.permute.xlu1 %1446  ;;  %1786 = vmatmul.mubr.msk.f32.vlgmr.msra.gmra.mrb[0].mxu1 %vm437_vm2, %v1182_v30 }
 0x3ab   : > { %v1449_v33 = vmul.f32 %v1447_v32, %v1443_v31 }
 0x3b0   : > { %1796 = vmatmul.mubr.msk.f32.vlgmr.msra.gmra.mrb[0].mxu0 %vm437_vm2, %v1449_v33 }
 0x47d   : > { %v1342_v34 = vpop.f32.mrb[0].mxu1 }
 0x47e   : > { %v1787_v35 = vpop.f32.mrb[1].mxu1 }
 0x483   : > { %v1521_v36 = vpop.f32.mrb[0].mxu0 }
 0x484   : > { %v1798_v37 = vadd.f32 %v1521_v36, %v1342_v34  ;;  %v1797_v38 = vpop.f32.mrb[1].mxu0 }
 0x486   : > { %1527 = vst.msk [vmem:[%s2259_s9] sm:$0xff] %vm1526_vm6, %v1798_v37 }
 0x487 PF: > { %s1710_s13 = sshll.u32 %s2052_s22, 1  ;;  %s1544_s8 = sshll.u32 %s2259_s9, 4  ;;  %s2363_s8 = int_to_ptr.vmem [resolvable:$true] %s1544_s8 }
 0x488   : > { %s1540_s5 = sadd.s32 %s2048_s21, %s1710_s13  ;;  %s1529_s12 = scalar_lea.sflag [#allocation9], %s2248_s10 }
 0x489   : > { %s1711_s14 = sshll.u32 %s1540_s5, 7  ;;  %s1942_s30 = scalar_lea.vmem %s2363_s8, 128 }
 0x48a   : > { %s1542_s7 = scalar_lea.hbm %s2429_s4, %s1711_s14  ;;  %p1943_p7 = scmp.ne.s32.totalorder %s2363_s8, %s1942_s30 }
 0x48b   : > { %s2078_s15 = smov [#allocation8]  }
 0x48c   : > { %p1944_p8 = pnand %p1943_p7, %p2203_p11  ;;  %s1946_s22 = sshll.u32 %s2078_s15, 4  ;;  %s1947_s22 = int_to_ptr.vmem [resolvable:$false] %s1946_s22 }
 0x48d   : > { %s1948_s21 = scalar_lea.vmem %s1947_s22, 256  ;;  %p1949_p10 = scmp.lt.s32.totalorder %s2363_s8, %s1947_s22 }
 0x48e   : > { %p1945_p9 = pneg %p1944_p8  ;;  %p1950_p13 = scmp.lt.s32.totalorder %s1948_s21, %s1942_s30 }
 0x490   : > { %p1951_p0 = por %p1950_p13, %p1949_p10 }
 0x492   : > { %p1952_p2 = pnand %p1951_p0, %p1945_p9 }
 0x494   : > { %1955 = shalt.err (!%p1952_p2)
}
 0x495   : > { %s1956_s9 = scalar_lea.hbm %s1542_s7, 128  ;;  %s1960_s6 = scalar_lea.hbm %s2429_s4, 512 }
 0x496   : > { %p1957_p1 = scmp.ne.s32.totalorder %s1542_s7, %s1956_s9  ;;  %p1961_p5 = scmp.lt.u32.totalorder %s1542_s7, %s2429_s4 }
 0x497   : > { %p1962_p6 = scmp.lt.u32.totalorder %s1960_s6, %s1956_s9  ;;  %p1964_p8 = scmp.lt.u32.totalorder %s1956_s9, %s1542_s7 }
 0x498   : > { %p1958_p3 = pnand %p1957_p1, %p2203_p11 }
 0x499   : > { %p1963_p7 = por %p1962_p6, %p1961_p5 }
 0x49a   : > { %p1959_p4 = pneg %p1958_p3 }
 0x49b   : > { %p1965_p10 = por %p1964_p8, %p1963_p7 }
 0x49d   : > { %p1966_p9 = pnand %p1965_p10, %p1959_p4 }
 0x49f   : > { %1969 = shalt.err (!%p1966_p9)
}
 0x4a0   : > { %1803 = dma.vmem_to_hbm [thread:$0]  (%p2203_p11), %s2363_s8, 128, %s1542_s7, %s1529_s12  }
 0x4a1 PF: > { %s2444_s14 = sld [smem:[#allocation11_spill]]  ;;  %p1809_p13 = scmp.ge.s32.totalorder %s2068_s26, 2 }
 0x4a3   : > { %p1806_p0 = pnand %p1809_p13, %p2207_p12 }
 0x4a7   : > { %s1556_s20 = sand.u32 1, %s2444_s14  }
 0x4a8   : > { %s1557_s30 = scalar_lea.sflag [#allocation9], %s1556_s20 }
 0x4a9   : > { %2019 = dma.done.wait (!%p1806_p0), %s1557_s30, 128  }
 0x4aa   : > { %2021 = vsyncadd (!%p1806_p0), %s1557_s30, 4294967168  ;;  %s17_s26 = sadd.s32 1, %s2068_s26   ;;  %s2446_s11 = sld [smem:[#allocation12_spill]] }
 0x4ab   : > { %p14_p2 = scmp.ge.s32.totalorder %s17_s26, 10   ;;  %s2447_s8 = sld [smem:[#allocation13_spill]] }
 0x4ac   : > { %s2448_s7 = sld [smem:[#allocation14_spill]]  ;;  %s2449_s15 = smov %s2036_s18 }
 0x4ad   : > { %s2450_s16 = smov %s2032_s17  ;;  %s2451_s17 = smov %s2218_s28 }
 0x4ae   : > { %s2452_s18 = smov %s2040_s19  ;;  %s2453_s19 = smov %s2215_s27 }
 0x4af   : > { %s2454_s20 = smov %s2056_s23  ;;  %s2455_s21 = smov %s2060_s24 }
 0x4b0   : > { %s2456_s22 = smov %s2064_s25  ;;  %s2457_s23 = smov %s2446_s11 }
 0x4b1   : > { %s2458_s24 = smov %s2447_s8  ;;  %16 = sbr.rel (!%p14_p2) target bundleno = 7 (0x7), region = 223 }
 0x4b2   : > { %s2459_s25 = smov %s2448_s7 }
 0x4b8   :  { %1562 = vsyncpa [#allocation9], 1 }
 0x4b9   :  { %1564 = vsyncpa [#allocation9 + $0x1], 1 }

</bundles_post_ra>
